<compile_context>
chip_gen: v7x
topology: tpu7x:2x2x1
jax: 0.10.0
libtpu: 0.0.40
codegen_flags: <defaults>
</compile_context>

<pallas_src>
import functools

import jax
import jax.numpy as jnp
from jax.experimental import pallas as pl
from jax.experimental.pallas import tpu as pltpu


_MIX_CONSTANTS = (0x9E3779B9, 0x85EBCA77, 0xC2B2AE3D, 0x27D4EB2F)


def _mix_bits(h):
    """Multiply-free avalanche (add-constant + xorshift32) on uint32 scalars/arrays."""
    h = h.astype(jnp.uint32)
    for c in _MIX_CONSTANTS:
        h = h + jnp.uint32(c)
        h = h ^ (h << 13)
        h = h ^ (h >> 17)
        h = h ^ (h << 5)
    return h


def _round_up(x, m):
    return (x + m - 1) // m * m


def _obfuscator_kernel(seed_ref, x_ref, masked_ref, mask_ref, *,
                       threshold, group_size, num_features):
    """One (bm, width) row slab. width == group_size * num_features (lane-folded)."""
    bm, width = x_ref.shape
    base = pl.program_id(0) * (bm * group_size)      # first original batch row of this block
    seed = seed_ref[0].astype(jnp.uint32)
    thr = jnp.uint32(threshold)

    # --- lane-dense keep factor for the whole (bm, width) input slab -------------------
    sub = jax.lax.broadcasted_iota(jnp.int32, (bm, width), 0)
    if group_size > 1:
        gshift = group_size.bit_length() - 1         # group_size is a power of two here
        fshift = num_features.bit_length() - 1       # num_features is a power of two here
        grp = jax.lax.broadcasted_iota(jnp.int32, (bm, width), 1) >> fshift
        rows = base + (sub << gshift) + grp          # original batch-row id per element
    else:
        rows = base + sub
    bits = _mix_bits(rows.astype(jnp.uint32) ^ seed)
    keep = (bits >= thr).astype(x_ref.dtype)         # 1.0 where the row is kept
    masked_ref[...] = x_ref[...] * keep

    # --- (bm, group_size) obfuscation-mask output (same hash -> consistent with keep) --
    sub_m = jax.lax.broadcasted_iota(jnp.int32, (bm, group_size), 0)
    lane_m = jax.lax.broadcasted_iota(jnp.int32, (bm, group_size), 1)
    if group_size > 1:
        rows_m = base + (sub_m << gshift) + lane_m
    else:
        rows_m = base + sub_m
    bits_m = _mix_bits(rows_m.astype(jnp.uint32) ^ seed)
    mask_ref[...] = (bits_m < thr).astype(jnp.float32)


def random_obfuscator(x, seed, *, pretraining_ratio, target_block_bytes=2 * 1024 * 1024):
    """x: (batch, num_features). Returns (masked_input, obfuscated_vars[batch, 1])."""
    batch, num_features = x.shape
    itemsize = jnp.dtype(x.dtype).itemsize

    # Lane-fold: pack G consecutive rows into the 128-lane dimension when features are
    # narrow, so every load/store of x uses full vregs and unmasked stores.
    group = 1
    if num_features < 128 and 128 % num_features == 0:
        g = 128 // num_features
        if batch % g == 0:
            group = g
    rows = batch // group
    width = group * num_features
    xv = x.reshape(rows, width)

    # Byte-targeted row blocks; small inputs become a single block (grid=(1,)).
    row_bytes = max(width * itemsize, 1)
    bm = max(8, (target_block_bytes // row_bytes) // 8 * 8)
    bm = min(bm, _round_up(rows, 8))
    padded_rows = _round_up(rows, bm)
    if padded_rows != rows:
        # TODO(synk): tail padding costs one extra HBM copy of the tail rows; a
        # pl.when-guarded partial last block would avoid it.
        xv = jnp.pad(xv, ((0, padded_rows - rows), (0, 0)))
    n_blocks = padded_rows // bm

    threshold = min(int(float(pretraining_ratio) * (2 ** 32)), 2 ** 32 - 1)
    # Pre-mix the seed so consecutive seeds do not produce overlapping row streams.
    seed_mixed = _mix_bits(jnp.asarray(seed, dtype=jnp.uint32)).astype(jnp.int32).reshape(1)

    kernel = functools.partial(
        _obfuscator_kernel,
        threshold=threshold,
        group_size=group,
        num_features=num_features,
    )

    block_bytes = bm * width * itemsize
    masked_p, mask_p = pl.pallas_call(
        kernel,
        out_shape=(
            jax.ShapeDtypeStruct((padded_rows, width), x.dtype),     # masked_input (folded)
            jax.ShapeDtypeStruct((padded_rows, group), jnp.float32), # obfuscated_vars (folded)
        ),
        grid_spec=pltpu.PrefetchScalarGridSpec(
            num_scalar_prefetch=1,
            grid=(n_blocks,),
            in_specs=[pl.BlockSpec((bm, width), lambda i, s: (i, 0))],
            out_specs=(
                pl.BlockSpec((bm, width), lambda i, s: (i, 0)),
                pl.BlockSpec((bm, group), lambda i, s: (i, 0)),
            ),
        ),
        compiler_params=pltpu.CompilerParams(
            dimension_semantics=("parallel",),
            vmem_limit_bytes=max(32 * 1024 * 1024, 6 * block_bytes),
        ),
    )(seed_mixed, xv)

    masked = masked_p[:rows].reshape(batch, num_features)
    mask = mask_p[:rows].reshape(batch, 1)
    return masked, mask


if __name__ == "__main__":
    batch = 256
    num_features = 32
    pretraining_ratio = 0.3
    seed = 0

    key = jax.random.PRNGKey(0)
    x = jax.random.normal(key, (batch, num_features), dtype=jnp.float32)

    masked, mask = random_obfuscator(x, seed, pretraining_ratio=pretraining_ratio)
    masked = jax.block_until_ready(masked)
    mask = jax.block_until_ready(mask)

    # Shape checks.
    assert masked.shape == (batch, num_features), masked.shape
    assert mask.shape == (batch, 1), mask.shape

    # Mask is strictly {0, 1}.
    assert bool(jnp.all((mask == 0.0) | (mask == 1.0)))

    # Exact reproduction of the in-kernel counter hash with plain jnp.
    thr = min(int(pretraining_ratio * (2 ** 32)), 2 ** 32 - 1)
    seed_m = _mix_bits(jnp.asarray(seed, dtype=jnp.uint32))
    ref_bits = _mix_bits(jnp.arange(batch, dtype=jnp.uint32) ^ seed_m)
    ref_mask = (ref_bits < jnp.uint32(thr)).astype(jnp.float32)[:, None]
    assert bool(jnp.array_equal(mask, ref_mask))

    # Forward invariant: masked_input == (1 - mask) * x.
    expected = (1.0 - mask) * x
    assert jnp.allclose(masked, expected, atol=1e-6, rtol=1e-6), \
        float(jnp.max(jnp.abs(masked - expected)))

    # Loose statistical sanity on the Bernoulli rate (p=0.3, n=256 -> very wide band).
    rate = float(jnp.mean(mask))
    assert 0.05 < rate < 0.65, rate

    print("KERNEL_OK")
</pallas_src>

<mosaic_0001>
module attributes {stable_mosaic.version = 11 : i64} {
  func.func @_obfuscator_kernel(%arg0: i32, %arg1: memref<1xi32, #tpu.memory_space<smem>>, %arg2: memref<64x128xf32, #tpu.memory_space<vmem>>, %arg3: memref<64x128xf32, #tpu.memory_space<vmem>>, %arg4: memref<64x4xf32, #tpu.memory_space<vmem>>) attributes {dimension_semantics = [#tpu.dimension_semantics<parallel>], iteration_bounds = array<i64: 1>, scalar_prefetch = 1 : i64, scratch_operands = 0 : i64, tpu.core_type = #tpu.core_type<tc>, window_params = [{transform_indices = @transform_0, window_bounds = array<i64: 64, 128>}, {transform_indices = @transform_1, window_bounds = array<i64: 64, 128>}, {transform_indices = @transform_2, window_bounds = array<i64: 64, 4>}]} {
    %c256_i32 = arith.constant 256 : i32
    %0 = arith.muli %arg0, %c256_i32 : i32
    %c0 = arith.constant 0 : index
    %1 = memref.load %arg1[%c0] : memref<1xi32, #tpu.memory_space<smem>>
    %2 = tpu.iota {dimensions = array<i32: 0>} : vector<64x128xi32>
    %3 = tpu.iota {dimensions = array<i32: 1>} : vector<64x128xi32>
    %c5_i32 = arith.constant 5 : i32
    %4 = vector.broadcast %c5_i32 : i32 to vector<64x128xi32>
    %5 = arith.shrsi %3, %4 : vector<64x128xi32>
    %c2_i32 = arith.constant 2 : i32
    %6 = vector.broadcast %c2_i32 : i32 to vector<64x128xi32>
    %7 = arith.shli %2, %6 : vector<64x128xi32>
    %8 = vector.broadcast %0 : i32 to vector<64x128xi32>
    %9 = arith.addi %8, %7 : vector<64x128xi32>
    %10 = arith.addi %9, %5 : vector<64x128xi32>
    %11 = vector.broadcast %1 : i32 to vector<64x128xi32>
    %12 = arith.xori %10, %11 : vector<64x128xi32>
    %c-1640531527_i32 = arith.constant -1640531527 : i32
    %13 = vector.broadcast %c-1640531527_i32 : i32 to vector<64x128xi32>
    %14 = arith.addi %12, %13 : vector<64x128xi32>
    %c13_i32 = arith.constant 13 : i32
    %15 = vector.broadcast %c13_i32 : i32 to vector<64x128xi32>
    %16 = arith.shli %14, %15 : vector<64x128xi32>
    %17 = arith.xori %14, %16 : vector<64x128xi32>
    %c17_i32 = arith.constant 17 : i32
    %18 = vector.broadcast %c17_i32 : i32 to vector<64x128xi32>
    %19 = arith.shrui %17, %18 : vector<64x128xi32>
    %20 = arith.xori %17, %19 : vector<64x128xi32>
    %c5_i32_0 = arith.constant 5 : i32
    %21 = vector.broadcast %c5_i32_0 : i32 to vector<64x128xi32>
    %22 = arith.shli %20, %21 : vector<64x128xi32>
    %23 = arith.xori %20, %22 : vector<64x128xi32>
    %c-2048144777_i32 = arith.constant -2048144777 : i32
    %24 = vector.broadcast %c-2048144777_i32 : i32 to vector<64x128xi32>
    %25 = arith.addi %23, %24 : vector<64x128xi32>
    %c13_i32_1 = arith.constant 13 : i32
    %26 = vector.broadcast %c13_i32_1 : i32 to vector<64x128xi32>
    %27 = arith.shli %25, %26 : vector<64x128xi32>
    %28 = arith.xori %25, %27 : vector<64x128xi32>
    %c17_i32_2 = arith.constant 17 : i32
    %29 = vector.broadcast %c17_i32_2 : i32 to vector<64x128xi32>
    %30 = arith.shrui %28, %29 : vector<64x128xi32>
    %31 = arith.xori %28, %30 : vector<64x128xi32>
    %c5_i32_3 = arith.constant 5 : i32
    %32 = vector.broadcast %c5_i32_3 : i32 to vector<64x128xi32>
    %33 = arith.shli %31, %32 : vector<64x128xi32>
    %34 = arith.xori %31, %33 : vector<64x128xi32>
    %c-1028477379_i32 = arith.constant -1028477379 : i32
    %35 = vector.broadcast %c-1028477379_i32 : i32 to vector<64x128xi32>
    %36 = arith.addi %34, %35 : vector<64x128xi32>
    %c13_i32_4 = arith.constant 13 : i32
    %37 = vector.broadcast %c13_i32_4 : i32 to vector<64x128xi32>
    %38 = arith.shli %36, %37 : vector<64x128xi32>
    %39 = arith.xori %36, %38 : vector<64x128xi32>
    %c17_i32_5 = arith.constant 17 : i32
    %40 = vector.broadcast %c17_i32_5 : i32 to vector<64x128xi32>
    %41 = arith.shrui %39, %40 : vector<64x128xi32>
    %42 = arith.xori %39, %41 : vector<64x128xi32>
    %c5_i32_6 = arith.constant 5 : i32
    %43 = vector.broadcast %c5_i32_6 : i32 to vector<64x128xi32>
    %44 = arith.shli %42, %43 : vector<64x128xi32>
    %45 = arith.xori %42, %44 : vector<64x128xi32>
    %c668265263_i32 = arith.constant 668265263 : i32
    %46 = vector.broadcast %c668265263_i32 : i32 to vector<64x128xi32>
    %47 = arith.addi %45, %46 : vector<64x128xi32>
    %c13_i32_7 = arith.constant 13 : i32
    %48 = vector.broadcast %c13_i32_7 : i32 to vector<64x128xi32>
    %49 = arith.shli %47, %48 : vector<64x128xi32>
    %50 = arith.xori %47, %49 : vector<64x128xi32>
    %c17_i32_8 = arith.constant 17 : i32
    %51 = vector.broadcast %c17_i32_8 : i32 to vector<64x128xi32>
    %52 = arith.shrui %50, %51 : vector<64x128xi32>
    %53 = arith.xori %50, %52 : vector<64x128xi32>
    %c5_i32_9 = arith.constant 5 : i32
    %54 = vector.broadcast %c5_i32_9 : i32 to vector<64x128xi32>
    %55 = arith.shli %53, %54 : vector<64x128xi32>
    %56 = arith.xori %53, %55 : vector<64x128xi32>
    %c1288490188_i32 = arith.constant 1288490188 : i32
    %57 = vector.broadcast %c1288490188_i32 : i32 to vector<64x128xi32>
    %58 = arith.cmpi uge, %56, %57 : vector<64x128xi32>
    %59 = arith.extui %58 : vector<64x128xi1> to vector<64x128xi32>
    %60 = arith.sitofp %59 : vector<64x128xi32> to vector<64x128xf32>
    %c0_10 = arith.constant 0 : index
    %c0_11 = arith.constant 0 : index
    %61 = vector.load %arg2[%c0_10, %c0_11] : memref<64x128xf32, #tpu.memory_space<vmem>>, vector<64x128xf32>
    %62 = arith.mulf %61, %60 : vector<64x128xf32>
    %c0_12 = arith.constant 0 : index
    %c0_13 = arith.constant 0 : index
    %63 = vector.load %arg3[%c0_12, %c0_13] : memref<64x128xf32, #tpu.memory_space<vmem>>, vector<64x128xf32>
    tpu.vector_store %arg3[%c0_12, %c0_13], %62 {strides = array<i32>} : memref<64x128xf32, #tpu.memory_space<vmem>>, vector<64x128xf32>,
    %64 = tpu.iota {dimensions = array<i32: 0>} : vector<64x4xi32>
    %65 = tpu.iota {dimensions = array<i32: 1>} : vector<64x4xi32>
    %c2_i32_14 = arith.constant 2 : i32
    %66 = vector.broadcast %c2_i32_14 : i32 to vector<64x4xi32>
    %67 = arith.shli %64, %66 : vector<64x4xi32>
    %68 = vector.broadcast %0 : i32 to vector<64x4xi32>
    %69 = arith.addi %68, %67 : vector<64x4xi32>
    %70 = arith.addi %69, %65 : vector<64x4xi32>
    %71 = vector.broadcast %1 : i32 to vector<64x4xi32>
    %72 = arith.xori %70, %71 : vector<64x4xi32>
    %c-1640531527_i32_15 = arith.constant -1640531527 : i32
    %73 = vector.broadcast %c-1640531527_i32_15 : i32 to vector<64x4xi32>
    %74 = arith.addi %72, %73 : vector<64x4xi32>
    %c13_i32_16 = arith.constant 13 : i32
    %75 = vector.broadcast %c13_i32_16 : i32 to vector<64x4xi32>
    %76 = arith.shli %74, %75 : vector<64x4xi32>
    %77 = arith.xori %74, %76 : vector<64x4xi32>
    %c17_i32_17 = arith.constant 17 : i32
    %78 = vector.broadcast %c17_i32_17 : i32 to vector<64x4xi32>
    %79 = arith.shrui %77, %78 : vector<64x4xi32>
    %80 = arith.xori %77, %79 : vector<64x4xi32>
    %c5_i32_18 = arith.constant 5 : i32
    %81 = vector.broadcast %c5_i32_18 : i32 to vector<64x4xi32>
    %82 = arith.shli %80, %81 : vector<64x4xi32>
    %83 = arith.xori %80, %82 : vector<64x4xi32>
    %c-2048144777_i32_19 = arith.constant -2048144777 : i32
    %84 = vector.broadcast %c-2048144777_i32_19 : i32 to vector<64x4xi32>
    %85 = arith.addi %83, %84 : vector<64x4xi32>
    %c13_i32_20 = arith.constant 13 : i32
    %86 = vector.broadcast %c13_i32_20 : i32 to vector<64x4xi32>
    %87 = arith.shli %85, %86 : vector<64x4xi32>
    %88 = arith.xori %85, %87 : vector<64x4xi32>
    %c17_i32_21 = arith.constant 17 : i32
    %89 = vector.broadcast %c17_i32_21 : i32 to vector<64x4xi32>
    %90 = arith.shrui %88, %89 : vector<64x4xi32>
    %91 = arith.xori %88, %90 : vector<64x4xi32>
    %c5_i32_22 = arith.constant 5 : i32
    %92 = vector.broadcast %c5_i32_22 : i32 to vector<64x4xi32>
    %93 = arith.shli %91, %92 : vector<64x4xi32>
    %94 = arith.xori %91, %93 : vector<64x4xi32>
    %c-1028477379_i32_23 = arith.constant -1028477379 : i32
    %95 = vector.broadcast %c-1028477379_i32_23 : i32 to vector<64x4xi32>
    %96 = arith.addi %94, %95 : vector<64x4xi32>
    %c13_i32_24 = arith.constant 13 : i32
    %97 = vector.broadcast %c13_i32_24 : i32 to vector<64x4xi32>
    %98 = arith.shli %96, %97 : vector<64x4xi32>
    %99 = arith.xori %96, %98 : vector<64x4xi32>
    %c17_i32_25 = arith.constant 17 : i32
    %100 = vector.broadcast %c17_i32_25 : i32 to vector<64x4xi32>
    %101 = arith.shrui %99, %100 : vector<64x4xi32>
    %102 = arith.xori %99, %101 : vector<64x4xi32>
    %c5_i32_26 = arith.constant 5 : i32
    %103 = vector.broadcast %c5_i32_26 : i32 to vector<64x4xi32>
    %104 = arith.shli %102, %103 : vector<64x4xi32>
    %105 = arith.xori %102, %104 : vector<64x4xi32>
    %c668265263_i32_27 = arith.constant 668265263 : i32
    %106 = vector.broadcast %c668265263_i32_27 : i32 to vector<64x4xi32>
    %107 = arith.addi %105, %106 : vector<64x4xi32>
    %c13_i32_28 = arith.constant 13 : i32
    %108 = vector.broadcast %c13_i32_28 : i32 to vector<64x4xi32>
    %109 = arith.shli %107, %108 : vector<64x4xi32>
    %110 = arith.xori %107, %109 : vector<64x4xi32>
    %c17_i32_29 = arith.constant 17 : i32
    %111 = vector.broadcast %c17_i32_29 : i32 to vector<64x4xi32>
    %112 = arith.shrui %110, %111 : vector<64x4xi32>
    %113 = arith.xori %110, %112 : vector<64x4xi32>
    %c5_i32_30 = arith.constant 5 : i32
    %114 = vector.broadcast %c5_i32_30 : i32 to vector<64x4xi32>
    %115 = arith.shli %113, %114 : vector<64x4xi32>
    %116 = arith.xori %113, %115 : vector<64x4xi32>
    %c1288490188_i32_31 = arith.constant 1288490188 : i32
    %117 = vector.broadcast %c1288490188_i32_31 : i32 to vector<64x4xi32>
    %118 = arith.cmpi ult, %116, %117 : vector<64x4xi32>
    %119 = arith.extui %118 : vector<64x4xi1> to vector<64x4xi32>
    %120 = arith.sitofp %119 : vector<64x4xi32> to vector<64x4xf32>
    %c0_32 = arith.constant 0 : index
    %c0_33 = arith.constant 0 : index
    %121 = vector.load %arg4[%c0_32, %c0_33] : memref<64x4xf32, #tpu.memory_space<vmem>>, vector<64x4xf32>
    tpu.vector_store %arg4[%c0_32, %c0_33], %120 {strides = array<i32>} : memref<64x4xf32, #tpu.memory_space<vmem>>, vector<64x4xf32>,
    return
  }
  func.func @transform_0(%arg0: i32, %arg1: memref<1xi32, #tpu.memory_space<smem>>) -> (i32, i32) {
    %c0_i32 = arith.constant 0 : i32
    %c0_i32_0 = arith.constant 0 : i32
    return %arg0, %c0_i32 : i32, i32
  }
  func.func @transform_1(%arg0: i32, %arg1: memref<1xi32, #tpu.memory_space<smem>>) -> (i32, i32) {
    %c0_i32 = arith.constant 0 : i32
    %c0_i32_0 = arith.constant 0 : i32
    return %arg0, %c0_i32 : i32, i32
  }
  func.func @transform_2(%arg0: i32, %arg1: memref<1xi32, #tpu.memory_space<smem>>) -> (i32, i32) {
    %c0_i32 = arith.constant 0 : i32
    %c0_i32_0 = arith.constant 0 : i32
    return %arg0, %c0_i32 : i32, i32
  }
}

</mosaic_0001>

<bundles_post_ra>
// kernel: tpu_custom_call.1
= control target key start
LH: loop header
LB: loop body
LE: loop exit
PB: predicated region body
PF: predicated region fallthrough
CT: control target
= control target key end

     0   :  { %10 = vsyncpa [#allocation5], 0  ;;  %s904_s0 = inlined_call_operand.<no memory space> [shape: s32[1], index: 0, kind: input, shape index: {}]   ;;  %s905_s1 = inlined_call_operand.hbm [shape: f32[64,128], index: 1, kind: input, shape index: {}]   ;;  %s906_s2 = inlined_call_operand.hbm [shape: f32[64,128], index: 2, kind: output, shape index: {0}]   ;;  %s907_s3 = inlined_call_operand.vmem [shape: f32[64,4], index: 3, kind: output, shape index: {1}]  }
   0x1   :  { %11 = vsyncpa [#allocation6], 0  ;;  %s710_s12 = smov [#allocation4]   ;;  %s662_s16 = scalar_lea.hbm %s905_s1, 1024 }
   0x2   :  { %s17_s13 = sshll.u32 %s710_s12, 4  ;;  %p663_p0 = scmp.ne.s32.totalorder %s905_s1, %s662_s16  ;;  %s18_s13 = int_to_ptr.vmem [resolvable:$true] %s17_s13 }
   0x3   :  { %p666_p1 = scmp.lt.u32.totalorder %s662_s16, %s905_s1 }
   0x5   :  { %p668_p2 = pnand %p666_p1, %p663_p0 }
   0x7   :  { %671 = shalt.err (!%p668_p2)
}
   0x8   :  { %s672_s21 = scalar_lea.vmem %s18_s13, 1024  ;;  %p677_p4 = scmp.lt.s32.totalorder %s18_s13, %s18_s13 }
   0x9   :  { %p673_p3 = scmp.ne.s32.totalorder %s18_s13, %s672_s21  ;;  %p678_p5 = scmp.lt.s32.totalorder %s672_s21, %s672_s21 }
   0xb   :  { %p679_p6 = por %p678_p5, %p677_p4 }
   0xd   :  { %p680_p7 = pnand %p679_p6, %p673_p3 }
   0xf   :  { %683 = shalt.err (!%p680_p7)
}
  0x10   :  { %s711_s22 = smov 128   ;;  %s712_s23 = smov 8  }
  0x11   :  { %23 = dma.hbm_to_vmem [thread:$0]  %s905_s1, 1024, %s18_s13, [#allocation5], %s711_s22, %s711_s22, %s712_s23  }
  0x12   :  { %706 = dma.done.wait [#allocation5], 1024  }
  0x13   :  { %707 = vsyncadd [#allocation5], 4294966272  ;;  %v29_v0 = vlaneseq  ;;  %v755_v3 = vstv %s904_s0  ;;  %s714_s0 = smov [#allocation7]  }
  0x14   :  { %s625_s1 = sshll.u32 %s714_s0, 4  ;;  %s837_s1 = int_to_ptr.vmem [resolvable:$true] %s625_s1 }
  0x15   :  { %v30_v1 = vshrl.u32 %v29_v0, 7  ;;  %v750_v2 = vand.u32 127, %v29_v0  ;;  %s684_s28 = scalar_lea.vmem %s837_s1, 1024  ;;  %p689_p9 = scmp.lt.s32.totalorder %s837_s1, %s837_s1 }
  0x16   :  { %p685_p8 = scmp.ne.s32.totalorder %s837_s1, %s684_s28  ;;  %p690_p10 = scmp.lt.s32.totalorder %s684_s28, %s684_s28 }
  0x17   :  { %v40_v4 = vshra.s32 %v750_v2, 5  ;;  %v41_v5 = vshll.u32 %v30_v1, 2  ;;  %v758_v6 = vadd.s32 8, %v30_v1  ;;  %v760_v7 = vadd.s32 16, %v30_v1 }
  0x18   :  { %v762_v8 = vadd.s32 24, %v30_v1  ;;  %v764_v9 = vadd.s32 32, %v30_v1  ;;  %v766_v10 = vadd.s32 40, %v30_v1  ;;  %v768_v11 = vadd.s32 48, %v30_v1  ;;  %p691_p11 = por %p690_p10, %p689_p9 }
  0x19   :  { %v58_v12 = vadd.s32 %v41_v5, %v40_v4  ;;  %v42_v13 = vshll.u32 %v758_v6, 2  ;;  %v43_v14 = vshll.u32 %v760_v7, 2  ;;  %v772_v15 = vadd.s32 56, %v30_v1 }
  0x1a   :  { %v44_v16 = vshll.u32 %v762_v8, 2  ;;  %v45_v17 = vshll.u32 %v764_v9, 2  ;;  %v46_v18 = vshll.u32 %v766_v10, 2  ;;  %v778_v19 = vadd.s32 %v41_v5, %v750_v2  ;;  %p692_p12 = pnand %p691_p11, %p685_p8 }
  0x1b   :  { %v67_v20 = vxor.u32 %v755_v3, %v58_v12  ;;  %v59_v21 = vadd.s32 %v42_v13, %v40_v4  ;;  %v60_v22 = vadd.s32 %v43_v14, %v40_v4  ;;  %v47_v23 = vshll.u32 %v768_v11, 2 }
  0x1c   :  { %v61_v24 = vadd.s32 %v44_v16, %v40_v4  ;;  %v62_v25 = vadd.s32 %v45_v17, %v40_v4  ;;  %v63_v26 = vadd.s32 %v46_v18, %v40_v4  ;;  %v48_v27 = vshll.u32 %v772_v15, 2 }
  0x1d   :  { %v75_v28 = vadd.s32 2654435769, %v67_v20  ;;  %v68_v29 = vxor.u32 %v755_v3, %v59_v21  ;;  %v69_v30 = vxor.u32 %v755_v3, %v60_v22  ;;  %v64_v31 = vadd.s32 %v47_v23, %v40_v4 }
  0x1e   :  { %v70_v32 = vxor.u32 %v755_v3, %v61_v24  ;;  %v71_v33 = vxor.u32 %v755_v3, %v62_v25  ;;  %v72_v34 = vxor.u32 %v755_v3, %v63_v26  ;;  %v65_v35 = vadd.s32 %v48_v27, %v40_v4 }
  0x1f   :  { %v83_v36 = vshll.u32 %v75_v28, 13  ;;  %v76_v37 = vadd.s32 2654435769, %v68_v29  ;;  %v77_v38 = vadd.s32 2654435769, %v69_v30  ;;  %v73_v39 = vxor.u32 %v755_v3, %v64_v31 }
  0x20   :  { %v78_v40 = vadd.s32 2654435769, %v70_v32  ;;  %v79_v41 = vadd.s32 2654435769, %v71_v33  ;;  %v80_v42 = vadd.s32 2654435769, %v72_v34  ;;  %v74_v43 = vxor.u32 %v755_v3, %v65_v35 }
  0x21   :  { %v91_v44 = vxor.u32 %v83_v36, %v75_v28  ;;  %v84_v45 = vshll.u32 %v76_v37, 13  ;;  %v85_v46 = vshll.u32 %v77_v38, 13  ;;  %v81_v47 = vadd.s32 2654435769, %v73_v39 }
  0x22   :  { %v86_v48 = vshll.u32 %v78_v40, 13  ;;  %v87_v49 = vshll.u32 %v79_v41, 13  ;;  %v88_v50 = vshll.u32 %v80_v42, 13  ;;  %v82_v51 = vadd.s32 2654435769, %v74_v43 }
  0x23   :  { %v99_v52 = vshrl.u32 %v91_v44, 17  ;;  %v92_v53 = vxor.u32 %v84_v45, %v76_v37  ;;  %v93_v54 = vxor.u32 %v85_v46, %v77_v38  ;;  %v89_v55 = vshll.u32 %v81_v47, 13 }
  0x24   :  { %v94_v56 = vxor.u32 %v86_v48, %v78_v40  ;;  %v95_v57 = vxor.u32 %v87_v49, %v79_v41  ;;  %v96_v58 = vxor.u32 %v88_v50, %v80_v42  ;;  %v90_v59 = vshll.u32 %v82_v51, 13 }
  0x25   :  { %v107_v60 = vxor.u32 %v99_v52, %v91_v44  ;;  %v100_v61 = vshrl.u32 %v92_v53, 17  ;;  %v101_v62 = vshrl.u32 %v93_v54, 17  ;;  %v97_v63 = vxor.u32 %v89_v55, %v81_v47 }
  0x26   :  { %v102_v0 = vshrl.u32 %v94_v56, 17  ;;  %v103_v1 = vshrl.u32 %v95_v57, 17  ;;  %v104_v4 = vshrl.u32 %v96_v58, 17  ;;  %v98_v5 = vxor.u32 %v90_v59, %v82_v51 }
  0x27   :  { %v115_v12 = vshll.u32 %v107_v60, 5  ;;  %v108_v20 = vxor.u32 %v100_v61, %v92_v53  ;;  %v109_v21 = vxor.u32 %v101_v62, %v93_v54  ;;  %v105_v22 = vshrl.u32 %v97_v63, 17 }
  0x28   :  { %v110_v24 = vxor.u32 %v102_v0, %v94_v56  ;;  %v111_v25 = vxor.u32 %v103_v1, %v95_v57  ;;  %v112_v26 = vxor.u32 %v104_v4, %v96_v58  ;;  %v106_v28 = vshrl.u32 %v98_v5, 17 }
  0x29   :  { %v123_v29 = vxor.u32 %v115_v12, %v107_v60  ;;  %v116_v30 = vshll.u32 %v108_v20, 5  ;;  %v117_v31 = vshll.u32 %v109_v21, 5  ;;  %v113_v32 = vxor.u32 %v105_v22, %v97_v63 }
  0x2a   :  { %v118_v33 = vshll.u32 %v110_v24, 5  ;;  %v119_v34 = vshll.u32 %v111_v25, 5  ;;  %v120_v35 = vshll.u32 %v112_v26, 5  ;;  %v114_v36 = vxor.u32 %v106_v28, %v98_v5 }
  0x2b   :  { %v131_v37 = vadd.s32 2246822519, %v123_v29  ;;  %v124_v38 = vxor.u32 %v116_v30, %v108_v20  ;;  %v125_v39 = vxor.u32 %v117_v31, %v109_v21  ;;  %v121_v40 = vshll.u32 %v113_v32, 5 }
  0x2c   :  { %v126_v41 = vxor.u32 %v118_v33, %v110_v24  ;;  %v127_v42 = vxor.u32 %v119_v34, %v111_v25  ;;  %v128_v43 = vxor.u32 %v120_v35, %v112_v26  ;;  %v122_v44 = vshll.u32 %v114_v36, 5 }
  0x2d   :  { %v139_v45 = vshll.u32 %v131_v37, 13  ;;  %v132_v46 = vadd.s32 2246822519, %v124_v38  ;;  %v133_v47 = vadd.s32 2246822519, %v125_v39  ;;  %v129_v48 = vxor.u32 %v121_v40, %v113_v32 }
  0x2e   :  { %v134_v49 = vadd.s32 2246822519, %v126_v41  ;;  %v135_v50 = vadd.s32 2246822519, %v127_v42  ;;  %v136_v51 = vadd.s32 2246822519, %v128_v43  ;;  %v130_v52 = vxor.u32 %v122_v44, %v114_v36 }
  0x2f   :  { %v147_v53 = vxor.u32 %v139_v45, %v131_v37  ;;  %v140_v54 = vshll.u32 %v132_v46, 13  ;;  %v141_v55 = vshll.u32 %v133_v47, 13  ;;  %v137_v56 = vadd.s32 2246822519, %v129_v48 }
  0x30   :  { %v142_v57 = vshll.u32 %v134_v49, 13  ;;  %v143_v58 = vshll.u32 %v135_v50, 13  ;;  %v144_v59 = vshll.u32 %v136_v51, 13  ;;  %v138_v60 = vadd.s32 2246822519, %v130_v52 }
  0x31   :  { %v155_v61 = vshrl.u32 %v147_v53, 17  ;;  %v148_v62 = vxor.u32 %v140_v54, %v132_v46  ;;  %v149_v63 = vxor.u32 %v141_v55, %v133_v47  ;;  %v145_v0 = vshll.u32 %v137_v56, 13 }
  0x32   :  { %v150_v1 = vxor.u32 %v142_v57, %v134_v49  ;;  %v151_v4 = vxor.u32 %v143_v58, %v135_v50  ;;  %v152_v5 = vxor.u32 %v144_v59, %v136_v51  ;;  %v146_v12 = vshll.u32 %v138_v60, 13 }
  0x33   :  { %v163_v20 = vxor.u32 %v155_v61, %v147_v53  ;;  %v156_v21 = vshrl.u32 %v148_v62, 17  ;;  %v157_v22 = vshrl.u32 %v149_v63, 17  ;;  %v153_v24 = vxor.u32 %v145_v0, %v137_v56 }
  0x34   :  { %v158_v25 = vshrl.u32 %v150_v1, 17  ;;  %v159_v26 = vshrl.u32 %v151_v4, 17  ;;  %v160_v28 = vshrl.u32 %v152_v5, 17  ;;  %v154_v29 = vxor.u32 %v146_v12, %v138_v60 }
  0x35   :  { %v171_v30 = vshll.u32 %v163_v20, 5  ;;  %v164_v31 = vxor.u32 %v156_v21, %v148_v62  ;;  %v165_v32 = vxor.u32 %v157_v22, %v149_v63  ;;  %v161_v33 = vshrl.u32 %v153_v24, 17 }
  0x36   :  { %v166_v34 = vxor.u32 %v158_v25, %v150_v1  ;;  %v167_v35 = vxor.u32 %v159_v26, %v151_v4  ;;  %v168_v36 = vxor.u32 %v160_v28, %v152_v5  ;;  %v162_v37 = vshrl.u32 %v154_v29, 17 }
  0x37   :  { %v179_v38 = vxor.u32 %v171_v30, %v163_v20  ;;  %v172_v39 = vshll.u32 %v164_v31, 5  ;;  %v173_v40 = vshll.u32 %v165_v32, 5  ;;  %v169_v41 = vxor.u32 %v161_v33, %v153_v24 }
  0x38   :  { %v174_v42 = vshll.u32 %v166_v34, 5  ;;  %v175_v43 = vshll.u32 %v167_v35, 5  ;;  %v176_v44 = vshll.u32 %v168_v36, 5  ;;  %v170_v45 = vxor.u32 %v162_v37, %v154_v29 }
  0x39   :  { %v187_v46 = vadd.s32 3266489917, %v179_v38  ;;  %v180_v47 = vxor.u32 %v172_v39, %v164_v31  ;;  %v181_v48 = vxor.u32 %v173_v40, %v165_v32  ;;  %v177_v49 = vshll.u32 %v169_v41, 5 }
  0x3a   :  { %v182_v50 = vxor.u32 %v174_v42, %v166_v34  ;;  %v183_v51 = vxor.u32 %v175_v43, %v167_v35  ;;  %v184_v52 = vxor.u32 %v176_v44, %v168_v36  ;;  %v178_v53 = vshll.u32 %v170_v45, 5 }
  0x3b   :  { %v195_v54 = vshll.u32 %v187_v46, 13  ;;  %v188_v55 = vadd.s32 3266489917, %v180_v47  ;;  %v189_v56 = vadd.s32 3266489917, %v181_v48  ;;  %v185_v57 = vxor.u32 %v177_v49, %v169_v41 }
  0x3c   :  { %v190_v58 = vadd.s32 3266489917, %v182_v50  ;;  %v191_v59 = vadd.s32 3266489917, %v183_v51  ;;  %v192_v60 = vadd.s32 3266489917, %v184_v52  ;;  %v186_v61 = vxor.u32 %v178_v53, %v170_v45 }
  0x3d   :  { %v203_v62 = vxor.u32 %v195_v54, %v187_v46  ;;  %v196_v63 = vshll.u32 %v188_v55, 13  ;;  %v197_v0 = vshll.u32 %v189_v56, 13  ;;  %v193_v1 = vadd.s32 3266489917, %v185_v57 }
  0x3e   :  { %v198_v4 = vshll.u32 %v190_v58, 13  ;;  %v199_v5 = vshll.u32 %v191_v59, 13  ;;  %v200_v12 = vshll.u32 %v192_v60, 13  ;;  %v194_v20 = vadd.s32 3266489917, %v186_v61 }
  0x3f   :  { %v211_v21 = vshrl.u32 %v203_v62, 17  ;;  %v204_v22 = vxor.u32 %v196_v63, %v188_v55  ;;  %v205_v24 = vxor.u32 %v197_v0, %v189_v56  ;;  %v201_v25 = vshll.u32 %v193_v1, 13 }
  0x40   :  { %v206_v26 = vxor.u32 %v198_v4, %v190_v58  ;;  %v207_v28 = vxor.u32 %v199_v5, %v191_v59  ;;  %v208_v29 = vxor.u32 %v200_v12, %v192_v60  ;;  %v202_v30 = vshll.u32 %v194_v20, 13 }
  0x41   :  { %v219_v31 = vxor.u32 %v211_v21, %v203_v62  ;;  %v212_v32 = vshrl.u32 %v204_v22, 17  ;;  %v213_v33 = vshrl.u32 %v205_v24, 17  ;;  %v209_v34 = vxor.u32 %v201_v25, %v193_v1 }
  0x42   :  { %v214_v35 = vshrl.u32 %v206_v26, 17  ;;  %v215_v36 = vshrl.u32 %v207_v28, 17  ;;  %v216_v37 = vshrl.u32 %v208_v29, 17  ;;  %v210_v38 = vxor.u32 %v202_v30, %v194_v20 }
  0x43   :  { %v227_v39 = vshll.u32 %v219_v31, 5  ;;  %v220_v40 = vxor.u32 %v212_v32, %v204_v22  ;;  %v221_v41 = vxor.u32 %v213_v33, %v205_v24  ;;  %v217_v42 = vshrl.u32 %v209_v34, 17 }
  0x44   :  { %v222_v43 = vxor.u32 %v214_v35, %v206_v26  ;;  %v223_v44 = vxor.u32 %v215_v36, %v207_v28  ;;  %v224_v45 = vxor.u32 %v216_v37, %v208_v29  ;;  %v218_v46 = vshrl.u32 %v210_v38, 17 }
  0x45   :  { %v235_v47 = vxor.u32 %v227_v39, %v219_v31  ;;  %v228_v48 = vshll.u32 %v220_v40, 5  ;;  %v229_v49 = vshll.u32 %v221_v41, 5  ;;  %v225_v50 = vxor.u32 %v217_v42, %v209_v34 }
  0x46   :  { %v230_v51 = vshll.u32 %v222_v43, 5  ;;  %v231_v52 = vshll.u32 %v223_v44, 5  ;;  %v232_v53 = vshll.u32 %v224_v45, 5  ;;  %v226_v54 = vxor.u32 %v218_v46, %v210_v38 }
  0x47   :  { %v243_v55 = vadd.s32 668265263, %v235_v47  ;;  %v236_v56 = vxor.u32 %v228_v48, %v220_v40  ;;  %v237_v57 = vxor.u32 %v229_v49, %v221_v41  ;;  %v233_v58 = vshll.u32 %v225_v50, 5 }
  0x48   :  { %v238_v59 = vxor.u32 %v230_v51, %v222_v43  ;;  %v239_v60 = vxor.u32 %v231_v52, %v223_v44  ;;  %v240_v61 = vxor.u32 %v232_v53, %v224_v45  ;;  %v234_v62 = vshll.u32 %v226_v54, 5 }
  0x49   :  { %v251_v63 = vshll.u32 %v243_v55, 13  ;;  %v244_v0 = vadd.s32 668265263, %v236_v56  ;;  %v245_v1 = vadd.s32 668265263, %v237_v57  ;;  %v241_v4 = vxor.u32 %v233_v58, %v225_v50 }
  0x4a   :  { %v246_v5 = vadd.s32 668265263, %v238_v59  ;;  %v247_v12 = vadd.s32 668265263, %v239_v60  ;;  %v248_v20 = vadd.s32 668265263, %v240_v61  ;;  %v242_v21 = vxor.u32 %v234_v62, %v226_v54 }
  0x4b   :  { %v259_v22 = vxor.u32 %v251_v63, %v243_v55  ;;  %v252_v24 = vshll.u32 %v244_v0, 13  ;;  %v253_v25 = vshll.u32 %v245_v1, 13  ;;  %v249_v26 = vadd.s32 668265263, %v241_v4  ;;  %v323_v60 = vld [vmem:[#allocation4] sm:$0xff] }
  0x4c   :  { %v254_v28 = vshll.u32 %v246_v5, 13  ;;  %v255_v29 = vshll.u32 %v247_v12, 13  ;;  %v256_v30 = vshll.u32 %v248_v20, 13  ;;  %v250_v31 = vadd.s32 668265263, %v242_v21  ;;  %v324_v21 = vld [vmem:[#allocation4 + $0x8] sm:$0xff] }
  0x4d   :  { %v267_v32 = vshrl.u32 %v259_v22, 17  ;;  %v260_v33 = vxor.u32 %v252_v24, %v244_v0  ;;  %v261_v34 = vxor.u32 %v253_v25, %v245_v1  ;;  %v257_v35 = vshll.u32 %v249_v26, 13 }
  0x4e   :  { %v262_v36 = vxor.u32 %v254_v28, %v246_v5  ;;  %v263_v37 = vxor.u32 %v255_v29, %v247_v12  ;;  %v264_v38 = vxor.u32 %v256_v30, %v248_v20  ;;  %v258_v39 = vshll.u32 %v250_v31, 13  ;;  %v326_v29 = vld [vmem:[#allocation4 + $0x18] sm:$0xff]  ;;  %v327_v30 = vld [vmem:[#allocation4 + $0x20] sm:$0xff] }
  0x4f   :  { %v275_v40 = vxor.u32 %v267_v32, %v259_v22  ;;  %v268_v41 = vshrl.u32 %v260_v33, 17  ;;  %v269_v42 = vshrl.u32 %v261_v34, 17  ;;  %v265_v43 = vxor.u32 %v257_v35, %v249_v26  ;;  %v325_v22 = vld [vmem:[#allocation4 + $0x10] sm:$0xff] }
  0x50   :  { %v270_v44 = vshrl.u32 %v262_v36, 17  ;;  %v271_v45 = vshrl.u32 %v263_v37, 17  ;;  %v272_v46 = vshrl.u32 %v264_v38, 17  ;;  %v266_v47 = vxor.u32 %v258_v39, %v250_v31  ;;  %v329_v39 = vld [vmem:[#allocation4 + $0x30] sm:$0xff] }
  0x51   :  { %v283_v48 = vshll.u32 %v275_v40, 5  ;;  %v276_v49 = vxor.u32 %v268_v41, %v260_v33  ;;  %v277_v50 = vxor.u32 %v269_v42, %v261_v34  ;;  %v273_v51 = vshrl.u32 %v265_v43, 17 }
  0x52   :  { %v278_v52 = vxor.u32 %v270_v44, %v262_v36  ;;  %v279_v53 = vxor.u32 %v271_v45, %v263_v37  ;;  %v280_v54 = vxor.u32 %v272_v46, %v264_v38  ;;  %v274_v55 = vshrl.u32 %v266_v47, 17  ;;  %v328_v38 = vld [vmem:[#allocation4 + $0x28] sm:$0xff] }
  0x53   :  { %v291_v56 = vxor.u32 %v283_v48, %v275_v40  ;;  %v284_v57 = vshll.u32 %v276_v49, 5  ;;  %v285_v58 = vshll.u32 %v277_v50, 5  ;;  %v281_v59 = vxor.u32 %v273_v51, %v265_v43 }
  0x54   :  { %v286_v61 = vshll.u32 %v278_v52, 5  ;;  %v287_v62 = vshll.u32 %v279_v53, 5  ;;  %v288_v63 = vshll.u32 %v280_v54, 5  ;;  %v282_v0 = vxor.u32 %v274_v55, %v266_v47 }
  0x55   :  { %vm299_vm0 = vcmp.ge.u32.totalorder %v291_v56, 1288490188  ;;  %v292_v1 = vxor.u32 %v284_v57, %v276_v49  ;;  %v293_v4 = vxor.u32 %v285_v58, %v277_v50  ;;  %v289_v5 = vshll.u32 %v281_v59, 5 }
  0x56   :  { %v713_v12 = vmov 0.0   ;;  %v294_v24 = vxor.u32 %v286_v61, %v278_v52  ;;  %v295_v25 = vxor.u32 %v287_v62, %v279_v53  ;;  %v296_v26 = vxor.u32 %v288_v63, %v280_v54  ;;  %v330_v53 = vld [vmem:[#allocation4 + $0x38] sm:$0xff] }
  0x57   :  { %v641_v20 = vsel %vm299_vm0, 1.0, %v713_v12  ;;  %vm300_vm1 = vcmp.ge.u32.totalorder %v292_v1, 1288490188  ;;  %vm301_vm2 = vcmp.ge.u32.totalorder %v293_v4, 1288490188  ;;  %v297_v31 = vxor.u32 %v289_v5, %v281_v59 }
  0x58   :  { %v331_v28 = vmul.f32 %v641_v20, %v323_v60  ;;  %v642_v32 = vsel %vm300_vm1, 1.0, %v713_v12  ;;  %v643_v33 = vsel %vm301_vm2, 1.0, %v713_v12  ;;  %vm302_vm3 = vcmp.ge.u32.totalorder %v294_v24, 1288490188 }
  0x59   :  { %vm303_vm4 = vcmp.ge.u32.totalorder %v295_v25, 1288490188  ;;  %v332_v34 = vmul.f32 %v642_v32, %v324_v21  ;;  %v333_v35 = vmul.f32 %v643_v33, %v325_v22  ;;  %v644_v36 = vsel %vm302_vm3, 1.0, %v713_v12 }
  0x5a   :  { %339 = vst [vmem:[#allocation7] sm:$0xff] %v331_v28  ;;  %v645_v37 = vsel %vm303_vm4, 1.0, %v713_v12  ;;  %v334_v40 = vmul.f32 %v644_v36, %v326_v29  ;;  %vm304_vm5 = vcmp.ge.u32.totalorder %v296_v26, 1288490188  ;;  %vm305_vm6 = vcmp.ge.u32.totalorder %v297_v31, 1288490188 }
  0x5b   :  { %v335_v41 = vmul.f32 %v645_v37, %v327_v30  ;;  %340 = vst [vmem:[#allocation7 + $0x8] sm:$0xff] %v332_v34  ;;  %341 = vst [vmem:[#allocation7 + $0x10] sm:$0xff] %v333_v35  ;;  %v646_v42 = vsel %vm304_vm5, 1.0, %v713_v12  ;;  %v647_v43 = vsel %vm305_vm6, 1.0, %v713_v12  ;;  %v290_v44 = vshll.u32 %v282_v0, 5 }
  0x5c   :  { %v355_v45 = vxor.u32 %v778_v19, %v755_v3  ;;  %342 = vst [vmem:[#allocation7 + $0x18] sm:$0xff] %v334_v40  ;;  %v336_v46 = vmul.f32 %v646_v42, %v328_v38  ;;  %v337_v47 = vmul.f32 %v647_v43, %v329_v39  ;;  %v348_v48 = vadd.s32 %v42_v13, %v750_v2 }
  0x5d   :  { %343 = vst [vmem:[#allocation7 + $0x20] sm:$0xff] %v335_v41  ;;  %v349_v49 = vadd.s32 %v43_v14, %v750_v2  ;;  %v298_v50 = vxor.u32 %v290_v44, %v282_v0  ;;  %v350_v52 = vadd.s32 %v44_v16, %v750_v2  ;;  %v351_v19 = vadd.s32 %v45_v17, %v750_v2 }
  0x5e   :  { %v363_v51 = vadd.s32 2654435769, %v355_v45  ;;  %344 = vst [vmem:[#allocation7 + $0x28] sm:$0xff] %v336_v46  ;;  %345 = vst [vmem:[#allocation7 + $0x30] sm:$0xff] %v337_v47  ;;  %v356_v6 = vxor.u32 %v348_v48, %v755_v3  ;;  %v352_v7 = vadd.s32 %v46_v18, %v750_v2  ;;  %v353_v8 = vadd.s32 %v47_v23, %v750_v2 }
  0x5f   :  { %v357_v13 = vxor.u32 %v349_v49, %v755_v3  ;;  %vm306_vm7 = vcmp.ge.u32.totalorder %v298_v50, 1288490188  ;;  %v358_v14 = vxor.u32 %v350_v52, %v755_v3  ;;  %v359_v16 = vxor.u32 %v351_v19, %v755_v3 }
  0x60   :  { %v371_v9 = vshll.u32 %v363_v51, 13  ;;  %v648_v17 = vsel %vm306_vm7, 1.0, %v713_v12  ;;  %v364_v54 = vadd.s32 2654435769, %v356_v6  ;;  %v360_v56 = vxor.u32 %v352_v7, %v755_v3 }
  0x61   :  { %v365_v55 = vadd.s32 2654435769, %v357_v13  ;;  %v338_v10 = vmul.f32 %v648_v17, %v330_v53  ;;  %v366_v57 = vadd.s32 2654435769, %v358_v14  ;;  %v367_v58 = vadd.s32 2654435769, %v359_v16 }
  0x62   :  { %v379_v18 = vxor.u32 %v371_v9, %v363_v51  ;;  %v372_v11 = vshll.u32 %v364_v54, 13  ;;  %v368_v59 = vadd.s32 2654435769, %v360_v56  ;;  %v361_v60 = vxor.u32 %v353_v8, %v755_v3 }
  0x63   :  { %v373_v23 = vshll.u32 %v365_v55, 13  ;;  %346 = vst [vmem:[#allocation7 + $0x38] sm:$0xff] %v338_v10  ;;  %v374_v62 = vshll.u32 %v366_v57, 13  ;;  %v375_v63 = vshll.u32 %v367_v58, 13  ;;  %v354_v0 = vadd.s32 %v48_v27, %v750_v2 }
  0x64   :  { %v387_v61 = vshrl.u32 %v379_v18, 17  ;;  %v380_v1 = vxor.u32 %v372_v11, %v364_v54  ;;  %v376_v5 = vshll.u32 %v368_v59, 13  ;;  %v369_v20 = vadd.s32 2654435769, %v361_v60 }
  0x65   :  { %v381_v4 = vxor.u32 %v373_v23, %v365_v55 }
  0x66   :  { %695 = shalt.err (!%p692_p12)
}
  0x67   :  { %s696_s4 = scalar_lea.hbm %s906_s2, 1024 }
  0x68   :  { %p697_p13 = scmp.ne.s32.totalorder %s906_s2, %s696_s4  ;;  %p700_p0 = scmp.lt.u32.totalorder %s696_s4, %s906_s2 }
  0x6a   :  { %p702_p1 = pnand %p700_p0, %p697_p13 }
  0x6c   :  { %705 = shalt.err (!%p702_p1)
}
  0x6d   :  { %631 = dma.vmem_to_hbm [thread:$0]  %s837_s1, 1024, %s906_s2, [#allocation6], %s711_s22, %s711_s22, %s712_s23   ;;  %v395_v2 = vxor.u32 %v387_v61, %v379_v18  ;;  %v382_v15 = vxor.u32 %v374_v62, %v366_v57  ;;  %v383_v27 = vxor.u32 %v375_v63, %v367_v58  ;;  %v362_v21 = vxor.u32 %v354_v0, %v755_v3 }
  0x6e   :  { %v388_v22 = vshrl.u32 %v380_v1, 17  ;;  %v389_v24 = vshrl.u32 %v381_v4, 17  ;;  %v384_v25 = vxor.u32 %v376_v5, %v368_v59  ;;  %v377_v26 = vshll.u32 %v369_v20, 13 }
  0x6f   :  { %v403_v28 = vshll.u32 %v395_v2, 5  ;;  %v390_v29 = vshrl.u32 %v382_v15, 17  ;;  %v391_v30 = vshrl.u32 %v383_v27, 17  ;;  %v370_v31 = vadd.s32 2654435769, %v362_v21 }
  0x70   :  { %v396_v32 = vxor.u32 %v388_v22, %v380_v1  ;;  %v397_v33 = vxor.u32 %v389_v24, %v381_v4  ;;  %v392_v34 = vshrl.u32 %v384_v25, 17  ;;  %v385_v35 = vxor.u32 %v377_v26, %v369_v20 }
  0x71   :  { %v411_v36 = vxor.u32 %v403_v28, %v395_v2  ;;  %v398_v37 = vxor.u32 %v390_v29, %v382_v15  ;;  %v399_v38 = vxor.u32 %v391_v30, %v383_v27  ;;  %v378_v39 = vshll.u32 %v370_v31, 13 }
  0x72   :  { %v404_v40 = vshll.u32 %v396_v32, 5  ;;  %v405_v41 = vshll.u32 %v397_v33, 5  ;;  %v400_v42 = vxor.u32 %v392_v34, %v384_v25  ;;  %v393_v3 = vshrl.u32 %v385_v35, 17 }
  0x73   :  { %v419_v43 = vadd.s32 2246822519, %v411_v36  ;;  %v406_v44 = vshll.u32 %v398_v37, 5  ;;  %v407_v45 = vshll.u32 %v399_v38, 5  ;;  %v386_v46 = vxor.u32 %v378_v39, %v370_v31 }
  0x74   :  { %v412_v47 = vxor.u32 %v404_v40, %v396_v32  ;;  %v413_v48 = vxor.u32 %v405_v41, %v397_v33  ;;  %v408_v49 = vshll.u32 %v400_v42, 5  ;;  %v401_v50 = vxor.u32 %v393_v3, %v385_v35 }
  0x75   :  { %v427_v51 = vshll.u32 %v419_v43, 13  ;;  %v414_v52 = vxor.u32 %v406_v44, %v398_v37  ;;  %v415_v19 = vxor.u32 %v407_v45, %v399_v38  ;;  %v394_v53 = vshrl.u32 %v386_v46, 17 }
  0x76   :  { %v420_v6 = vadd.s32 2246822519, %v412_v47  ;;  %v421_v13 = vadd.s32 2246822519, %v413_v48  ;;  %v416_v7 = vxor.u32 %v408_v49, %v400_v42  ;;  %v409_v8 = vshll.u32 %v401_v50, 5 }
  0x77   :  { %v435_v9 = vxor.u32 %v427_v51, %v419_v43  ;;  %v422_v14 = vadd.s32 2246822519, %v414_v52  ;;  %v423_v16 = vadd.s32 2246822519, %v415_v19  ;;  %v402_v17 = vxor.u32 %v394_v53, %v386_v46 }
  0x78   :  { %v428_v54 = vshll.u32 %v420_v6, 13  ;;  %v429_v55 = vshll.u32 %v421_v13, 13  ;;  %v424_v56 = vadd.s32 2246822519, %v416_v7  ;;  %v417_v10 = vxor.u32 %v409_v8, %v401_v50 }
  0x79   :  { %v443_v18 = vshrl.u32 %v435_v9, 17  ;;  %v430_v57 = vshll.u32 %v422_v14, 13  ;;  %v431_v58 = vshll.u32 %v423_v16, 13  ;;  %v410_v11 = vshll.u32 %v402_v17, 5 }
  0x7a   :  { %v436_v23 = vxor.u32 %v428_v54, %v420_v6  ;;  %v437_v59 = vxor.u32 %v429_v55, %v421_v13  ;;  %v432_v60 = vshll.u32 %v424_v56, 13  ;;  %v425_v61 = vadd.s32 2246822519, %v417_v10 }
  0x7b   :  { %v451_v62 = vxor.u32 %v443_v18, %v435_v9  ;;  %v438_v63 = vxor.u32 %v430_v57, %v422_v14  ;;  %v439_v0 = vxor.u32 %v431_v58, %v423_v16  ;;  %v418_v1 = vxor.u32 %v410_v11, %v402_v17 }
  0x7c   :  { %v444_v4 = vshrl.u32 %v436_v23, 17  ;;  %v445_v5 = vshrl.u32 %v437_v59, 17  ;;  %v440_v20 = vxor.u32 %v432_v60, %v424_v56  ;;  %v433_v2 = vshll.u32 %v425_v61, 13 }
  0x7d   :  { %v459_v15 = vshll.u32 %v451_v62, 5  ;;  %v446_v27 = vshrl.u32 %v438_v63, 17  ;;  %v447_v21 = vshrl.u32 %v439_v0, 17  ;;  %v426_v22 = vadd.s32 2246822519, %v418_v1 }
  0x7e   :  { %v452_v24 = vxor.u32 %v444_v4, %v436_v23  ;;  %v453_v25 = vxor.u32 %v445_v5, %v437_v59  ;;  %v448_v26 = vshrl.u32 %v440_v20, 17  ;;  %v441_v28 = vxor.u32 %v433_v2, %v425_v61 }
  0x7f   :  { %v467_v29 = vxor.u32 %v459_v15, %v451_v62  ;;  %v454_v30 = vxor.u32 %v446_v27, %v438_v63  ;;  %v455_v31 = vxor.u32 %v447_v21, %v439_v0  ;;  %v434_v32 = vshll.u32 %v426_v22, 13 }
  0x80   :  { %v460_v33 = vshll.u32 %v452_v24, 5  ;;  %v461_v34 = vshll.u32 %v453_v25, 5  ;;  %v456_v35 = vxor.u32 %v448_v26, %v440_v20  ;;  %v449_v36 = vshrl.u32 %v441_v28, 17 }
  0x81   :  { %v475_v37 = vadd.s32 3266489917, %v467_v29  ;;  %v462_v38 = vshll.u32 %v454_v30, 5  ;;  %v463_v39 = vshll.u32 %v455_v31, 5  ;;  %v442_v40 = vxor.u32 %v434_v32, %v426_v22 }
  0x82   :  { %v468_v41 = vxor.u32 %v460_v33, %v452_v24  ;;  %v469_v42 = vxor.u32 %v461_v34, %v453_v25  ;;  %v464_v3 = vshll.u32 %v456_v35, 5  ;;  %v457_v43 = vxor.u32 %v449_v36, %v441_v28 }
  0x83   :  { %v483_v44 = vshll.u32 %v475_v37, 13  ;;  %v470_v45 = vxor.u32 %v462_v38, %v454_v30  ;;  %v471_v46 = vxor.u32 %v463_v39, %v455_v31  ;;  %v450_v47 = vshrl.u32 %v442_v40, 17 }
  0x84   :  { %v476_v48 = vadd.s32 3266489917, %v468_v41  ;;  %v477_v49 = vadd.s32 3266489917, %v469_v42  ;;  %v472_v50 = vxor.u32 %v464_v3, %v456_v35  ;;  %v465_v51 = vshll.u32 %v457_v43, 5 }
  0x85   :  { %v491_v52 = vxor.u32 %v483_v44, %v475_v37  ;;  %v478_v19 = vadd.s32 3266489917, %v470_v45  ;;  %v479_v53 = vadd.s32 3266489917, %v471_v46  ;;  %v458_v6 = vxor.u32 %v450_v47, %v442_v40 }
  0x86   :  { %v484_v13 = vshll.u32 %v476_v48, 13  ;;  %v485_v7 = vshll.u32 %v477_v49, 13  ;;  %v480_v8 = vadd.s32 3266489917, %v472_v50  ;;  %v473_v9 = vxor.u32 %v465_v51, %v457_v43 }
  0x87   :  { %v499_v14 = vshrl.u32 %v491_v52, 17  ;;  %v486_v16 = vshll.u32 %v478_v19, 13  ;;  %v487_v17 = vshll.u32 %v479_v53, 13  ;;  %v466_v54 = vshll.u32 %v458_v6, 5 }
  0x88   :  { %v492_v55 = vxor.u32 %v484_v13, %v476_v48  ;;  %v493_v56 = vxor.u32 %v485_v7, %v477_v49  ;;  %v488_v10 = vshll.u32 %v480_v8, 13  ;;  %v481_v18 = vadd.s32 3266489917, %v473_v9 }
  0x89   :  { %v507_v57 = vxor.u32 %v499_v14, %v491_v52  ;;  %v494_v58 = vxor.u32 %v486_v16, %v478_v19  ;;  %v495_v11 = vxor.u32 %v487_v17, %v479_v53  ;;  %v474_v23 = vxor.u32 %v466_v54, %v458_v6 }
  0x8a   :  { %v500_v59 = vshrl.u32 %v492_v55, 17  ;;  %v501_v60 = vshrl.u32 %v493_v56, 17  ;;  %v496_v61 = vxor.u32 %v488_v10, %v480_v8  ;;  %v489_v62 = vshll.u32 %v481_v18, 13 }
  0x8b   :  { %v515_v63 = vshll.u32 %v507_v57, 5  ;;  %v502_v0 = vshrl.u32 %v494_v58, 17  ;;  %v503_v1 = vshrl.u32 %v495_v11, 17  ;;  %v482_v4 = vadd.s32 3266489917, %v474_v23 }
  0x8c   :  { %v508_v5 = vxor.u32 %v500_v59, %v492_v55  ;;  %v509_v20 = vxor.u32 %v501_v60, %v493_v56  ;;  %v504_v2 = vshrl.u32 %v496_v61, 17  ;;  %v497_v15 = vxor.u32 %v489_v62, %v481_v18 }
  0x8d   :  { %v523_v27 = vxor.u32 %v515_v63, %v507_v57  ;;  %v510_v21 = vxor.u32 %v502_v0, %v494_v58  ;;  %v511_v22 = vxor.u32 %v503_v1, %v495_v11  ;;  %v490_v24 = vshll.u32 %v482_v4, 13 }
  0x8e   :  { %v516_v25 = vshll.u32 %v508_v5, 5  ;;  %v517_v26 = vshll.u32 %v509_v20, 5  ;;  %v512_v28 = vxor.u32 %v504_v2, %v496_v61  ;;  %v505_v29 = vshrl.u32 %v497_v15, 17 }
  0x8f   :  { %v531_v30 = vadd.s32 668265263, %v523_v27  ;;  %v518_v31 = vshll.u32 %v510_v21, 5  ;;  %v519_v32 = vshll.u32 %v511_v22, 5  ;;  %v498_v33 = vxor.u32 %v490_v24, %v482_v4 }
  0x90   :  { %v524_v34 = vxor.u32 %v516_v25, %v508_v5  ;;  %v525_v35 = vxor.u32 %v517_v26, %v509_v20  ;;  %v520_v36 = vshll.u32 %v512_v28, 5  ;;  %v513_v37 = vxor.u32 %v505_v29, %v497_v15 }
  0x91   :  { %v539_v38 = vshll.u32 %v531_v30, 13  ;;  %v526_v39 = vxor.u32 %v518_v31, %v510_v21  ;;  %v527_v40 = vxor.u32 %v519_v32, %v511_v22  ;;  %v506_v41 = vshrl.u32 %v498_v33, 17 }
  0x92   :  { %v532_v42 = vadd.s32 668265263, %v524_v34  ;;  %v533_v3 = vadd.s32 668265263, %v525_v35  ;;  %v528_v43 = vxor.u32 %v520_v36, %v512_v28  ;;  %v521_v44 = vshll.u32 %v513_v37, 5 }
  0x93   :  { %v547_v45 = vxor.u32 %v539_v38, %v531_v30  ;;  %v534_v46 = vadd.s32 668265263, %v526_v39  ;;  %v535_v47 = vadd.s32 668265263, %v527_v40  ;;  %v514_v48 = vxor.u32 %v506_v41, %v498_v33 }
  0x94   :  { %vm611_vm8 = vcmask 31744   ;;  %v540_v49 = vshll.u32 %v532_v42, 13  ;;  %v541_v50 = vshll.u32 %v533_v3, 13  ;;  %v536_v51 = vadd.s32 668265263, %v528_v43 }
  0x95   :  { %v529_v52 = vxor.u32 %v521_v44, %v513_v37  ;;  %v555_v19 = vshrl.u32 %v547_v45, 17  ;;  %v542_v53 = vshll.u32 %v534_v46, 13  ;;  %v543_v6 = vshll.u32 %v535_v47, 13 }
  0x96   :  { %v522_v13 = vshll.u32 %v514_v48, 5  ;;  %v548_v7 = vxor.u32 %v540_v49, %v532_v42  ;;  %v549_v8 = vxor.u32 %v541_v50, %v533_v3  ;;  %v544_v9 = vshll.u32 %v536_v51, 13 }
  0x97   :  { %v537_v14 = vadd.s32 668265263, %v529_v52  ;;  %v563_v16 = vxor.u32 %v555_v19, %v547_v45  ;;  %v550_v17 = vxor.u32 %v542_v53, %v534_v46  ;;  %v551_v54 = vxor.u32 %v543_v6, %v535_v47 }
  0x98   :  { %v530_v55 = vxor.u32 %v522_v13, %v514_v48  ;;  %v556_v56 = vshrl.u32 %v548_v7, 17  ;;  %v557_v10 = vshrl.u32 %v549_v8, 17  ;;  %v552_v18 = vxor.u32 %v544_v9, %v536_v51 }
  0x99   :  { %v545_v57 = vshll.u32 %v537_v14, 13  ;;  %v571_v58 = vshll.u32 %v563_v16, 5  ;;  %v558_v11 = vshrl.u32 %v550_v17, 17  ;;  %v559_v23 = vshrl.u32 %v551_v54, 17 }
  0x9a   :  { %v538_v59 = vadd.s32 668265263, %v530_v55  ;;  %v564_v60 = vxor.u32 %v556_v56, %v548_v7  ;;  %v565_v61 = vxor.u32 %v557_v10, %v549_v8  ;;  %v560_v62 = vshrl.u32 %v552_v18, 17 }
  0x9b   :  { %v553_v63 = vxor.u32 %v545_v57, %v537_v14  ;;  %v579_v0 = vxor.u32 %v571_v58, %v563_v16  ;;  %v566_v1 = vxor.u32 %v558_v11, %v550_v17  ;;  %v567_v4 = vxor.u32 %v559_v23, %v551_v54 }
  0x9c   :  { %v546_v5 = vshll.u32 %v538_v59, 13  ;;  %v572_v20 = vshll.u32 %v564_v60, 5  ;;  %v573_v2 = vshll.u32 %v565_v61, 5  ;;  %v568_v15 = vxor.u32 %v560_v62, %v552_v18 }
  0x9d   :  { %v561_v27 = vshrl.u32 %v553_v63, 17  ;;  %vm587_vm9 = vcmp.lt.u32.totalorder %v579_v0, 1288490188  ;;  %v574_v21 = vshll.u32 %v566_v1, 5  ;;  %v575_v22 = vshll.u32 %v567_v4, 5 }
  0x9e   :  { %v554_v24 = vxor.u32 %v546_v5, %v538_v59  ;;  %v649_v25 = vsel %vm587_vm9, 1.0, %v713_v12  ;;  %v580_v26 = vxor.u32 %v572_v20, %v564_v60  ;;  %v581_v28 = vxor.u32 %v573_v2, %v565_v61 }
  0x9f   :  { %v576_v29 = vshll.u32 %v568_v15, 5  ;;  %612 = vst.msk [vmem:[%s907_s3] sm:$0xff] %vm611_vm8, %v649_v25  ;;  %v582_v30 = vxor.u32 %v574_v21, %v566_v1  ;;  %v583_v31 = vxor.u32 %v575_v22, %v567_v4  ;;  %v569_v32 = vxor.u32 %v561_v27, %v553_v63 }
  0xa0   :  { %v562_v33 = vshrl.u32 %v554_v24, 17  ;;  %vm588_vm10 = vcmp.lt.u32.totalorder %v580_v26, 1288490188  ;;  %vm589_vm11 = vcmp.lt.u32.totalorder %v581_v28, 1288490188 }
  0xa1   :  { %v584_v34 = vxor.u32 %v576_v29, %v568_v15  ;;  %v650_v35 = vsel %vm588_vm10, 1.0, %v713_v12  ;;  %v651_v36 = vsel %vm589_vm11, 1.0, %v713_v12  ;;  %vm590_vm12 = vcmp.lt.u32.totalorder %v582_v30, 1288490188 }
  0xa2   :  { %vm591_vm13 = vcmp.lt.u32.totalorder %v583_v31, 1288490188  ;;  %613 = vst.msk [vmem:[%s907_s3 + $0x8] sm:$0xff] %vm611_vm8, %v650_v35  ;;  %614 = vst.msk [vmem:[%s907_s3 + $0x10] sm:$0xff] %vm611_vm8, %v651_v36  ;;  %v652_v37 = vsel %vm590_vm12, 1.0, %v713_v12  ;;  %v577_v39 = vshll.u32 %v569_v32, 5  ;;  %v570_v41 = vxor.u32 %v562_v33, %v554_v24 }
  0xa3   :  { %v653_v38 = vsel %vm591_vm13, 1.0, %v713_v12  ;;  %vm592_vm14 = vcmp.lt.u32.totalorder %v584_v34, 1288490188  ;;  %615 = vst.msk [vmem:[%s907_s3 + $0x18] sm:$0xff] %vm611_vm8, %v652_v37 }
  0xa4   :  { %616 = vst.msk [vmem:[%s907_s3 + $0x20] sm:$0xff] %vm611_vm8, %v653_v38  ;;  %v654_v40 = vsel %vm592_vm14, 1.0, %v713_v12  ;;  %v585_v42 = vxor.u32 %v577_v39, %v569_v32  ;;  %v578_v3 = vshll.u32 %v570_v41, 5 }
  0xa5   :  { %617 = vst.msk [vmem:[%s907_s3 + $0x28] sm:$0xff] %vm611_vm8, %v654_v40 }
  0xa6   :  { %vm593_vm15 = vcmp.lt.u32.totalorder %v585_v42, 1288490188  ;;  %v586_v44 = vxor.u32 %v578_v3, %v570_v41 }
  0xa7   :  { %v655_v43 = vsel %vm593_vm15, 1.0, %v713_v12 }
  0xa8   :  { %618 = vst.msk [vmem:[%s907_s3 + $0x30] sm:$0xff] %vm611_vm8, %v655_v43  ;;  %vm594_vm0 = vcmp.lt.u32.totalorder %v586_v44, 1288490188 }
  0xa9   :  { %v656_v45 = vsel %vm594_vm0, 1.0, %v713_v12 }
  0xaa   :  { %619 = vst.msk [vmem:[%s907_s3 + $0x38] sm:$0xff] %vm611_vm8, %v656_v45 }
  0xab   :  { %708 = dma.done.wait [#allocation6], 1024  }
  0xac   :  { %709 = vsyncadd [#allocation6], 4294966272 }
  0xad   :  { %639 = vsyncpa [#allocation5], 1 }
  0xae   :  { %640 = vsyncpa [#allocation6], 1 }

</bundles_post_ra>
